<compile_context>
chip_gen: v7x
topology: tpu7x:2x2x1
jax: 0.10.0
libtpu: 0.0.40
codegen_flags: <defaults>
</compile_context>

<pallas_src>
import jax
import jax.numpy as jnp
from jax import lax
from jax.experimental import pallas as pl
from jax.experimental.pallas import tpu as pltpu

LANE = 128
SUBLANES = 8
GROUP = SUBLANES * LANE           # 1024 elements per (8, 128) slab
MAX_GROUPS_PER_TILE = 1024        # 4 MiB f32 x-tile + 1 MiB int8 one-hot tile
NUM_CLASSES = 4


def _cdiv(a, b):
    return -(-a // b)


def _make_dice_sums_kernel(gpt, g_total, needs_mask):
    """Kernel closure: per-tile lane-resident partial sums of x*onehot and x."""

    def _emit(x, t, o_ref):
        # VPU-only reductions over the leading (non-layout) axis; partials stay
        # as (8, 128) vregs — no XLU full-reduce, no scalar SMEM RMW.
        o_ref[0, 0] = jnp.sum(x * t, axis=0)      # partial sum(x * onehot)
        o_ref[0, 1] = jnp.sum(x, axis=0)          # partial sum(x)

    def kernel(x_ref, t_ref, o_ref):
        x = x_ref[...].astype(jnp.float32)        # native dtype in HBM, f32 math
        t = t_ref[...].astype(jnp.float32)        # int8 {0,1} one-hot -> f32 (exact)
        if needs_mask:
            last = pl.num_programs(0) - 1

            @pl.when(pl.program_id(0) == last)
            def _():
                # Only the final tile overhangs the array; zero the overhang.
                gidx = lax.broadcasted_iota(jnp.int32, x.shape, 0)
                valid = (pl.program_id(0) * gpt + gidx) < g_total
                # Masking x alone suffices: t is always finite, so masked x
                # zeroes both the product and the x-sum in the invalid region.
                _emit(jnp.where(valid, x, 0.0), t, o_ref)

            @pl.when(pl.program_id(0) != last)
            def _():
                _emit(x, t, o_ref)
        else:
            _emit(x, t, o_ref)

    return kernel


def _dice_partial_sums(x_slabs, t_slabs):
    """Pallas reduction over (G, 8, 128) slabs -> (sum(x*onehot), sum(x))."""
    g_total = x_slabs.shape[0]
    num_tiles = _cdiv(g_total, MAX_GROUPS_PER_TILE)
    gpt = _cdiv(g_total, num_tiles)               # balanced tiles (<= 1024 slabs)
    num_tiles = _cdiv(g_total, gpt)
    needs_mask = (num_tiles * gpt) != g_total

    kernel = _make_dice_sums_kernel(gpt, g_total, needs_mask)

    partials = pl.pallas_call(
        kernel,
        out_shape=jax.ShapeDtypeStruct((num_tiles, 2, SUBLANES, LANE), jnp.float32),
        grid=(num_tiles,),
        in_specs=[
            pl.BlockSpec((gpt, SUBLANES, LANE), lambda i: (i, 0, 0)),
            pl.BlockSpec((gpt, SUBLANES, LANE), lambda i: (i, 0, 0)),
        ],
        out_specs=pl.BlockSpec((1, 2, SUBLANES, LANE), lambda i: (i, 0, 0, 0)),
        compiler_params=pltpu.CompilerParams(
            dimension_semantics=("parallel",),     # independent per-tile partials
            vmem_limit_bytes=40 * 1024 * 1024,     # ~10 MiB buffers + headroom
        ),
    )(x_slabs, t_slabs)

    return jnp.sum(partials[:, 0]), jnp.sum(partials[:, 1])


def dice_loss(inputs, targets, smooth=1.0):
    """Pallas implementation of DiceLoss.forward(inputs, targets, smooth)."""
    x_flat = inputs.reshape(-1)                                   # native dtype, NCHW order
    onehot = jax.nn.one_hot(targets.astype(jnp.int32), NUM_CLASSES, dtype=jnp.int8)
    t_flat = onehot.reshape(-1)                                   # (B,H,W,4) order, 1 B/elem
    n = x_flat.shape[0]
    assert n == t_flat.shape[0], "inputs must have 4*B*H*W elements"

    n_main = (n // GROUP) * GROUP
    inter = jnp.float32(0.0)
    sum_x = jnp.float32(0.0)

    if n_main:
        if n_main != n:
            # Rare ragged case: slicing the bulk materializes one copy; the
            # common multiple-of-1024 case below is a pure zero-copy reshape.
            x_main, t_main = x_flat[:n_main], t_flat[:n_main]
        else:
            x_main, t_main = x_flat, t_flat
        x_slabs = x_main.reshape(-1, SUBLANES, LANE)
        t_slabs = t_main.reshape(-1, SUBLANES, LANE)
        inter, sum_x = _dice_partial_sums(x_slabs, t_slabs)

    if n_main != n:
        # Tiny (<1024-element) tail handled in the wrapper.
        x_tail = x_flat[n_main:].astype(jnp.float32)
        t_tail = t_flat[n_main:].astype(jnp.float32)
        inter = inter + jnp.sum(x_tail * t_tail)
        sum_x = sum_x + jnp.sum(x_tail)

    # One-hot rows sum to exactly 1 per pixel (targets in [0, 4) as the torch
    # reference requires), so sum(onehot) == number of pixels.
    sum_t = jnp.float32(targets.size)
    dice = (2.0 * inter + smooth) / (sum_x + sum_t + smooth)
    return 1.0 - dice


def dice_loss_ref(inputs, targets, smooth=1.0):
    """Pure-JAX reference replicating the PyTorch forward exactly."""
    x_flat = inputs.reshape(-1).astype(jnp.float32)
    t_flat = jax.nn.one_hot(targets.astype(jnp.int32), NUM_CLASSES,
                            dtype=jnp.float32).reshape(-1)
    intersection = jnp.sum(x_flat * t_flat)
    dice = (2.0 * intersection + smooth) / (jnp.sum(x_flat) + jnp.sum(t_flat) + smooth)
    return 1.0 - dice


if __name__ == "__main__":
    key = jax.random.PRNGKey(0)
    k_in, k_tg = jax.random.split(key)

    B, C, H, W = 2, 4, 16, 16
    logits = jax.random.normal(k_in, (B, C, H, W), dtype=jnp.float32)
    inputs = jax.nn.softmax(logits, axis=1)              # NCHW probabilities
    targets = jax.random.randint(k_tg, (B, H, W), 0, 4)  # class indices 0..3

    out = dice_loss(inputs, targets, smooth=1.0)
    out = jax.block_until_ready(out)

    ref = dice_loss_ref(inputs, targets, smooth=1.0)
    assert jnp.allclose(out, ref, atol=1e-5, rtol=1e-5), (out, ref)

    print("KERNEL_OK")
</pallas_src>

<mosaic_0001>
module attributes {stable_mosaic.version = 11 : i64} {
  func.func @kernel(%arg0: i32, %arg1: memref<2x8x128xf32, #tpu.memory_space<vmem>>, %arg2: memref<2x8x128xi8, #tpu.memory_space<vmem>>, %arg3: memref<1x2x8x128xf32, #tpu.memory_space<vmem>>) attributes {dimension_semantics = [#tpu.dimension_semantics<parallel>], iteration_bounds = array<i64: 1>, scalar_prefetch = 0 : i64, scratch_operands = 0 : i64, tpu.core_type = #tpu.core_type<tc>, window_params = [{transform_indices = @transform_0, window_bounds = array<i64: 2, 8, 128>}, {transform_indices = @transform_1, window_bounds = array<i64: 2, 8, 128>}, {transform_indices = @transform_2, window_bounds = array<i64: 1, 2, 8, 128>}]} {
    %c0 = arith.constant 0 : index
    %c0_0 = arith.constant 0 : index
    %c0_1 = arith.constant 0 : index
    %0 = vector.load %arg1[%c0, %c0_0, %c0_1] : memref<2x8x128xf32, #tpu.memory_space<vmem>>, vector<2x8x128xf32>
    %c0_2 = arith.constant 0 : index
    %c0_3 = arith.constant 0 : index
    %c0_4 = arith.constant 0 : index
    %1 = vector.load %arg2[%c0_2, %c0_3, %c0_4] : memref<2x8x128xi8, #tpu.memory_space<vmem>>, vector<2x8x128xi8>
    %2 = arith.sitofp %1 : vector<2x8x128xi8> to vector<2x8x128xf32>
    %3 = arith.mulf %0, %2 : vector<2x8x128xf32>
    %cst = arith.constant dense<0.000000e+00> : vector<8x128xf32>
    %4 = vector.multi_reduction <add>, %3, %cst [0] : vector<2x8x128xf32> to vector<8x128xf32>
    %c0_5 = arith.constant 0 : index
    %c0_6 = arith.constant 0 : index
    %c0_7 = arith.constant 0 : index
    %c0_8 = arith.constant 0 : index
    %5 = vector.load %arg3[%c0_5, %c0_6, %c0_7, %c0_8] : memref<1x2x8x128xf32, #tpu.memory_space<vmem>>, vector<1x1x8x128xf32>
    %6 = vector.shape_cast %5 : vector<1x1x8x128xf32> to vector<8x128xf32>
    %7 = vector.shape_cast %4 : vector<8x128xf32> to vector<1x1x8x128xf32>
    tpu.vector_store %arg3[%c0_5, %c0_6, %c0_7, %c0_8], %7 {strides = array<i32>} : memref<1x2x8x128xf32, #tpu.memory_space<vmem>>, vector<1x1x8x128xf32>,
    %cst_9 = arith.constant dense<0.000000e+00> : vector<8x128xf32>
    %8 = vector.multi_reduction <add>, %0, %cst_9 [0] : vector<2x8x128xf32> to vector<8x128xf32>
    %c0_10 = arith.constant 0 : index
    %c1 = arith.constant 1 : index
    %c0_11 = arith.constant 0 : index
    %c0_12 = arith.constant 0 : index
    %9 = vector.load %arg3[%c0_10, %c1, %c0_11, %c0_12] : memref<1x2x8x128xf32, #tpu.memory_space<vmem>>, vector<1x1x8x128xf32>
    %10 = vector.shape_cast %9 : vector<1x1x8x128xf32> to vector<8x128xf32>
    %11 = vector.shape_cast %8 : vector<8x128xf32> to vector<1x1x8x128xf32>
    tpu.vector_store %arg3[%c0_10, %c1, %c0_11, %c0_12], %11 {strides = array<i32>} : memref<1x2x8x128xf32, #tpu.memory_space<vmem>>, vector<1x1x8x128xf32>,
    return
  }
  func.func @transform_0(%arg0: i32) -> (i32, i32, i32) {
    %c0_i32 = arith.constant 0 : i32
    %c0_i32_0 = arith.constant 0 : i32
    %c0_i32_1 = arith.constant 0 : i32
    return %arg0, %c0_i32, %c0_i32_0 : i32, i32, i32
  }
  func.func @transform_1(%arg0: i32) -> (i32, i32, i32) {
    %c0_i32 = arith.constant 0 : i32
    %c0_i32_0 = arith.constant 0 : i32
    %c0_i32_1 = arith.constant 0 : i32
    return %arg0, %c0_i32, %c0_i32_0 : i32, i32, i32
  }
  func.func @transform_2(%arg0: i32) -> (i32, i32, i32, i32) {
    %c0_i32 = arith.constant 0 : i32
    %c0_i32_0 = arith.constant 0 : i32
    %c0_i32_1 = arith.constant 0 : i32
    %c0_i32_2 = arith.constant 0 : i32
    return %arg0, %c0_i32, %c0_i32_0, %c0_i32_1 : i32, i32, i32, i32
  }
}

</mosaic_0001>

<bundles_post_ra>
// kernel: tpu_custom_call.1
= control target key start
LH: loop header
LB: loop body
LE: loop exit
PB: predicated region body
PF: predicated region fallthrough
CT: control target
= control target key end

     0   :  { %7 = vsyncpa [#allocation3], 0  ;;  %s220_s0 = inlined_call_operand.hbm [shape: f32[2,8,128], index: 0, kind: input, shape index: {}]   ;;  %s221_s1 = inlined_call_operand.hbm [shape: s8[2,8,128], index: 1, kind: input, shape index: {}]   ;;  %s222_s2 = inlined_call_operand.hbm [shape: f32[1,2,8,128], index: 2, kind: output, shape index: {}]  }
   0x1   :  { %8 = vsyncpa [#allocation6], 0 }
   0x2   :  { %9 = vsyncpa [#allocation4], 0  ;;  %s156_s9 = smov [#allocation2]   ;;  %s84_s13 = scalar_lea.hbm %s220_s0, 256 }
   0x3   :  { %s15_s10 = sshll.u32 %s156_s9, 4  ;;  %p85_p0 = scmp.ne.s32.totalorder %s220_s0, %s84_s13  ;;  %s16_s10 = int_to_ptr.vmem [resolvable:$true] %s15_s10 }
   0x4   :  { %p88_p1 = scmp.lt.u32.totalorder %s84_s13, %s220_s0 }
   0x6   :  { %p90_p2 = pnand %p88_p1, %p85_p0 }
   0x8   :  { %93 = shalt.err (!%p90_p2)
}
   0x9   :  { %s94_s18 = scalar_lea.vmem %s16_s10, 256  ;;  %p99_p4 = scmp.lt.s32.totalorder %s16_s10, %s16_s10 }
   0xa   :  { %p95_p3 = scmp.ne.s32.totalorder %s16_s10, %s94_s18  ;;  %p100_p5 = scmp.lt.s32.totalorder %s94_s18, %s94_s18 }
   0xc   :  { %p101_p6 = por %p100_p5, %p99_p4 }
   0xe   :  { %p102_p7 = pnand %p101_p6, %p95_p3 }
  0x10   :  { %105 = shalt.err (!%p102_p7)
}
  0x11   :  { %s157_s19 = smov 128   ;;  %s158_s20 = smov 8  }
  0x12   :  { %21 = dma.hbm_to_vmem [thread:$0]  %s220_s0, 256, %s16_s10, [#allocation3], %s157_s19, %s157_s19, %s158_s20  }
  0x13   :  { %s159_s23 = smov [#allocation5]   ;;  %s106_s27 = scalar_lea.hbm %s221_s1, 64 }
  0x14   :  { %s27_s24 = sshll.u32 %s159_s23, 4  ;;  %p107_p8 = scmp.ne.s32.totalorder %s221_s1, %s106_s27  ;;  %s28_s24 = int_to_ptr.vmem [resolvable:$true] %s27_s24 }
  0x15   :  { %p110_p9 = scmp.lt.u32.totalorder %s106_s27, %s221_s1 }
  0x17   :  { %p112_p10 = pnand %p110_p9, %p107_p8 }
  0x19   :  { %115 = shalt.err (!%p112_p10)
}
  0x1a   :  { %s116_s4 = scalar_lea.vmem %s28_s24, 64  ;;  %p121_p12 = scmp.lt.s32.totalorder %s28_s24, %s28_s24 }
  0x1b   :  { %p117_p11 = scmp.ne.s32.totalorder %s28_s24, %s116_s4  ;;  %p122_p13 = scmp.lt.s32.totalorder %s116_s4, %s116_s4 }
  0x1d   :  { %p123_p0 = por %p122_p13, %p121_p12 }
  0x1f   :  { %p124_p1 = pnand %p123_p0, %p117_p11 }
  0x21   :  { %127 = shalt.err (!%p124_p1)
}
  0x22   :  { %s160_s0 = smov 32   ;;  %s161_s5 = smov 2  }
  0x23   :  { %33 = dma.hbm_to_vmem [thread:$0]  %s221_s1, 64, %s28_s24, [#allocation6], %s160_s0, %s160_s0, %s161_s5  }
  0x24   :  { %150 = dma.done.wait [#allocation3], 256  }
  0x25   :  { %151 = vsyncadd [#allocation3], 4294967040 }
  0x26   :  { %152 = dma.done.wait [#allocation6], 64  }
  0x27   :  { %153 = vsyncadd [#allocation6], 4294967232  ;;  %v40_v0 = vld [vmem:[#allocation2] sm:$0xff]  ;;  %v41_v1 = vld [vmem:[#allocation2 + $0x8] sm:$0xff]  ;;  %s162_s8 = smov [#allocation7]  }
  0x28   :  { %v74_v2 = vld [vmem:[#allocation5] sm:$0xf]   ;;  %v52_v5 = vadd.f32 %v41_v1, %v40_v0  ;;  %s60_s9 = sshll.u32 %s162_s8, 4  ;;  %s61_s9 = int_to_ptr.vmem [resolvable:$true] %s60_s9 }
  0x29   :  { %v75_v3 = vunpack.c.0.s8 %v74_v2  ;;  %v76_v4 = vunpack.c.1.s8 %v74_v2  ;;  %s128_s1 = scalar_lea.vmem %s61_s9, 256  ;;  %p133_p3 = scmp.lt.s32.totalorder %s61_s9, %s61_s9 }
  0x2a   :  { %54 = vst [vmem:[#allocation7 + $0x8] sm:$0xff] %v52_v5  ;;  %p129_p2 = scmp.ne.s32.totalorder %s61_s9, %s128_s1  ;;  %p134_p4 = scmp.lt.s32.totalorder %s128_s1, %s128_s1 }
  0x2b   :  { %v46_v6 = vcvt.s32.f32 %v75_v3  ;;  %v47_v7 = vcvt.s32.f32 %v76_v4 }
  0x2c   :  { %p135_p5 = por %p134_p4, %p133_p3 }
  0x2d   :  { %v48_v8 = vmul.f32 %v46_v6, %v40_v0  ;;  %v49_v9 = vmul.f32 %v47_v7, %v41_v1 }
  0x2e   :  { %p136_p6 = pnand %p135_p5, %p129_p2 }
  0x2f   :  { %v50_v10 = vadd.f32 %v49_v9, %v48_v8 }
  0x31   :  { %51 = vst [vmem:[#allocation7] sm:$0xff] %v50_v10 }
  0x32   :  { %139 = shalt.err (!%p136_p6)
}
  0x33   :  { %s140_s12 = scalar_lea.hbm %s222_s2, 256 }
  0x34   :  { %p141_p7 = scmp.ne.s32.totalorder %s222_s2, %s140_s12  ;;  %p144_p8 = scmp.lt.u32.totalorder %s140_s12, %s222_s2 }
  0x36   :  { %p146_p9 = pnand %p144_p8, %p141_p7 }
  0x38   :  { %149 = shalt.err (!%p146_p9)
}
  0x39   :  { %66 = dma.vmem_to_hbm [thread:$0]  %s61_s9, 256, %s222_s2, [#allocation4], %s157_s19, %s157_s19, %s158_s20  }
  0x3a   :  { %154 = dma.done.wait [#allocation4], 256  }
  0x3b   :  { %155 = vsyncadd [#allocation4], 4294967040 }
  0x3c   :  { %70 = vsyncpa [#allocation3], 1 }
  0x3d   :  { %71 = vsyncpa [#allocation6], 1 }
  0x3e   :  { %72 = vsyncpa [#allocation4], 1 }

</bundles_post_ra>
